<compile_context>
chip_gen: v7x
topology: tpu7x:2x2x1
jax: 0.10.0
libtpu: 0.0.40
codegen_flags: <defaults>
</compile_context>

<pallas_src>
import functools

import jax
import jax.numpy as jnp
from jax.experimental import pallas as pl
from jax.experimental.pallas import tpu as pltpu


def _round_up(n, m):
    return ((n + m - 1) // m) * m


# ----------------------------------------------------------------------------
# In-kernel helper: sum consecutive lane-groups of width `group`.
# y: [rows, n_groups * group] f32 -> [rows, group].
# Uses 128-aligned half slices, then XLU rolls inside one vreg, when the layout
# allows; otherwise an unrolled (still aligned-where-possible) slice sum.
# ----------------------------------------------------------------------------
def _fold_expert_groups(y, group):
    width = y.shape[-1]
    n_groups = width // group
    if n_groups == 1:
        return y
    pow2 = (n_groups & (n_groups - 1)) == 0
    if pow2 and width % 128 == 0 and 128 % group == 0:
        # Halve with 128-aligned slices until a single 128-lane vreg remains.
        while width > 128:
            half = width // 2
            y = y[:, :half] + y[:, half:width]
            width = half
        # Shift-add inside the vreg via XLU rolls (separate slot from the VPU).
        phys = y.shape[-1]
        while width > group:
            half = width // 2
            # roll(y, phys - half)[j] == y[j + half] for j < phys - half
            y = y + pltpu.roll(y, shift=phys - half, axis=1)
            width = half
        return y[:, :group]
    # Generic fallback (e.g. non power-of-two expert count).
    acc = y[:, :group]
    for g in range(1, n_groups):
        acc = acc + y[:, g * group:(g + 1) * group]
    return acc


# ----------------------------------------------------------------------------
# Fused MMoE kernel (one batch tile):
#   y      = x @ [We | Gstk] + [be | bg]        [Bb, E*U + T*E]   (one matmul)
#   expert = relu(y[:, :E*U])                    (e-major blocks of U)
#   per task t: gate_t = softmax(y[:, E*U + t*E : E*U + (t+1)*E])
#   gate_rep = gates @ expand_bd (0/1)           [Bb, T*E*U]  (lane replication)
#   mixed_t  = group-sum_E(expert * gate_rep_t)  [Bb, U]
#   h   = relu(concat(mixed_t) @ W1_blockdiag + b1)   [Bb, T*H]
#   out = h @ W2_blockdiag_padded + b2_padded         [Bb, pad_l] (lane-dense)
# ----------------------------------------------------------------------------
def mmoe_kernel(x_ref, win_ref, bin_ref, expand_ref, w1_ref, b1_ref,
                w2_ref, b2_ref, o_ref, *, E, U, T):
    EU = E * U
    x = x_ref[...]                                            # [Bb, F] bf16

    # Fused expert + gate projection: ONE MXU matmul, f32 accumulation.
    y = jnp.dot(x, win_ref[...], preferred_element_type=jnp.float32)
    y = y + bin_ref[...]                                      # [Bb, EU + T*E]
    expert = jnp.maximum(y[:, :EU], 0.0)                      # [Bb, E*U]
    logits = y[:, EU:EU + T * E]                              # [Bb, T*E]

    # Per-task softmax (T, E tiny -> static unroll). Approx reciprocal (EUP)
    # plus one Newton step -> effectively exact.
    gates = []
    for t in range(T):
        lg = logits[:, t * E:(t + 1) * E]
        m = jnp.max(lg, axis=-1, keepdims=True)
        p = jnp.exp(lg - m)
        d = jnp.sum(p, axis=-1, keepdims=True)
        inv = pl.reciprocal(d, approx=True)
        inv = inv * (2.0 - d * inv)
        gates.append(p * inv)                                 # [Bb, E]
    gate_all = jnp.concatenate(gates, axis=-1)                # [Bb, T*E]

    # Replicate each gate across its expert's U lanes with one tiny 0/1 matmul
    # (MXU slack); per-task slices of the result are E*U (=256) aligned.
    gate_rep = jnp.dot(gate_all, expand_ref[...],
                       preferred_element_type=jnp.float32)    # [Bb, T*E*U]

    # Gate-weighted expert mixture: one full-width VPU multiply per task and a
    # log2(E) shift-add group reduction (XLU rolls) -> [Bb, U] each.
    mixed = []
    for t in range(T):
        weighted = expert * gate_rep[:, t * EU:(t + 1) * EU]  # [Bb, E*U]
        mixed.append(_fold_expert_groups(weighted, U))        # [Bb, U]
    mixed_all = jnp.concatenate(mixed, axis=-1)               # [Bb, T*U]

    # Both head layers for all tasks, batched via block-diagonal weights.
    # bf16 MXU operands, f32 accumulation; output slab is 128-lane padded.
    h = jnp.dot(mixed_all.astype(jnp.bfloat16), w1_ref[...],
                preferred_element_type=jnp.float32)
    h = jnp.maximum(h + b1_ref[...], 0.0)                     # [Bb, T*H]
    out = jnp.dot(h.astype(jnp.bfloat16), w2_ref[...],
                  preferred_element_type=jnp.float32)
    o_ref[...] = (out + b2_ref[...]).astype(o_ref.dtype)      # [Bb, pad_l]


def mmoe_forward(x, params):
    """Fused MMoE forward. x: [B, F] float32 -> [B, sum(L)] float32."""
    B, F = x.shape
    E, U, T, H = params["E"], params["U"], params["T"], params["H"]
    sum_l, pad_l = params["sum_labels"], params["pad_labels"]
    EU, TE, TU, TH = E * U, T * E, T * U, T * H
    TEU = T * E * U

    w_in = params["in_w_fused"]        # [F, EU+TE]  bf16
    b_in = params["in_b_fused"]        # [1, EU+TE]  f32
    expand = params["gate_expand_bd"]  # [TE, TEU]   f32 (0/1)
    w1 = params["head_w1_bd"]          # [TU, TH]    bf16
    b1 = params["head_b1_stacked"]     # [1, TH]     f32
    w2 = params["head_w2_bd_pad"]      # [TH, pad_l] bf16
    b2 = params["head_b2_pad"]         # [1, pad_l]  f32

    # Batch tiling: one tile for B <= 512 (block == full dim -> always legal),
    # 512-row tiles above that (cdiv grid with automatic tail masking).
    block_b = B if B <= 512 else 512
    grid = (pl.cdiv(B, block_b),)

    # bf16 x halves the HBM->VMEM bytes of the only streamed input.
    x_bf = x.astype(jnp.bfloat16)

    def row_map(i):
        return (i, 0)

    def const_map(i):   # weights: same block every batch tile (VMEM-resident)
        return (0, 0)

    # VMEM budget (v7x: 64 MiB physical / 32 MiB default scoped): streamed
    # tiles + resident weight slabs (conservatively assume double-buffering
    # everywhere) + live f32 intermediates, with generous headroom.
    est = (
        2 * block_b * F * 2                        # x tile (bf16), dbl-buffered
        + 2 * block_b * pad_l * 4                  # out tile (f32), dbl-buffered
        + 2 * (F * (EU + TE) * 2 + (EU + TE) * 4)  # fused in-proj weights/bias
        + 2 * TE * TEU * 4                         # gate expand matrix
        + 2 * (TU * TH * 2 + TH * 4)               # head-1 weights/bias
        + 2 * (TH * pad_l * 2 + pad_l * 4)         # head-2 weights/bias (padded)
        + block_b * (2 * EU + TEU + TE + TH + pad_l) * 4  # live intermediates
    )
    vmem_limit = int(min(max(2 * est + (4 << 20), 16 << 20), 32 << 20))

    kernel = functools.partial(mmoe_kernel, E=E, U=U, T=T)
    out = pl.pallas_call(
        kernel,
        out_shape=jax.ShapeDtypeStruct((B, pad_l), jnp.float32),
        grid=grid,
        in_specs=[
            pl.BlockSpec((block_b, F), row_map),      # x (only streamed input)
            pl.BlockSpec((F, EU + TE), const_map),    # fused expert+gate weights
            pl.BlockSpec((1, EU + TE), const_map),    # fused expert+gate biases
            pl.BlockSpec((TE, TEU), const_map),       # gate->lane expand (0/1)
            pl.BlockSpec((TU, TH), const_map),        # block-diag head W1
            pl.BlockSpec((1, TH), const_map),         # stacked head b1
            pl.BlockSpec((TH, pad_l), const_map),     # block-diag head W2 (padded)
            pl.BlockSpec((1, pad_l), const_map),      # stacked head b2 (padded)
        ],
        out_specs=pl.BlockSpec((block_b, pad_l), row_map),
        compiler_params=pltpu.CompilerParams(
            dimension_semantics=("parallel",),
            vmem_limit_bytes=vmem_limit),
    )(x_bf, w_in, b_in, expand, w1, b1, w2, b2)

    return out[:, :sum_l]


# ----------------------------------------------------------------------------
# Pure-JAX reference (mirrors the PyTorch forward exactly) for sanity checking.
# ----------------------------------------------------------------------------
def mmoe_reference(x, params):
    we = params["expert_w"]            # [F, U, E]
    be = params["expert_b"]            # [U, E]
    expert = jnp.einsum("bf,fue->bue", x, we) + be
    expert = jnp.maximum(expert, 0.0)                         # [B, U, E]
    outs = []
    for t in range(params["T"]):
        gate = jax.nn.softmax(x @ params["gate_w"][t] + params["gate_b"][t][0],
                              axis=-1)                        # [B, E]
        mixed = jnp.sum(expert * gate[:, None, :], axis=2)    # [B, U]
        h = jnp.maximum(mixed @ params["head_w1"][t] + params["head_b1"][t][0],
                        0.0)
        outs.append(h @ params["head_w2"][t] + params["head_b2"][t][0])
    return jnp.concatenate(outs, axis=1)


# ----------------------------------------------------------------------------
# Deterministic parameter construction (xavier-normal-like, synthetic) plus
# kernel-friendly re-layouts (fused in-projection, stacked gates, block-diag
# heads, 0/1 gate-expansion matrix, 128-lane padded head-2).
# ----------------------------------------------------------------------------
def make_params(key, F, U, E, H, label_dict):
    T = len(label_dict)
    keys = jax.random.split(key, 4 + 4 * T)
    ki = iter(keys)

    def xavier(k, shape, fan_in, fan_out):
        std = (2.0 / (fan_in + fan_out)) ** 0.5
        return std * jax.random.normal(k, shape, dtype=jnp.float32)

    expert_w = xavier(next(ki), (F, U, E), U * E, F * E)      # [F, U, E]
    expert_b = jnp.zeros((U, E), dtype=jnp.float32)

    gate_w, gate_b = [], []
    head_w1, head_b1, head_w2, head_b2 = [], [], [], []
    for t in range(T):
        gate_w.append(xavier(next(ki), (F, E), E, F))
        gate_b.append(jnp.zeros((1, E), dtype=jnp.float32))
        head_w1.append(xavier(next(ki), (U, H), U, H))
        head_b1.append(jnp.zeros((1, H), dtype=jnp.float32))
        L = int(label_dict[t])
        head_w2.append(xavier(next(ki), (H, L), H, L))
        head_b2.append(jnp.zeros((1, L), dtype=jnp.float32))

    sum_l = int(sum(label_dict))
    pad_l = _round_up(sum_l, 128)

    # ---- kernel layouts (host-side JAX, one-time) ---------------------------
    # experts flattened e-major: [F,U,E] -> [F,E,U] -> [F, E*U]
    expert_w_flat = jnp.transpose(expert_w, (0, 2, 1)).reshape(F, E * U)
    expert_b_flat = jnp.transpose(expert_b, (1, 0)).reshape(1, E * U)
    # all task gates stacked along N, then FUSED with the expert weights
    gate_w_stacked = jnp.concatenate(gate_w, axis=1)          # [F, T*E]
    gate_b_stacked = jnp.concatenate(gate_b, axis=1)          # [1, T*E]
    in_w_fused = jnp.concatenate([expert_w_flat, gate_w_stacked], axis=1)
    in_b_fused = jnp.concatenate([expert_b_flat, gate_b_stacked], axis=1)
    # 0/1 gate -> lane replication matrix, block-diag over tasks: [T*E, T*E*U]
    expand_e = jnp.repeat(jnp.eye(E, dtype=jnp.float32), U, axis=1)
    gate_expand_bd = jax.scipy.linalg.block_diag(*([expand_e] * T))
    # heads as block-diagonal weights; head-2 zero-padded to a 128-lane multiple
    head_w1_bd = jax.scipy.linalg.block_diag(*head_w1)        # [T*U, T*H]
    head_b1_stacked = jnp.concatenate(head_b1, axis=1)        # [1, T*H]
    head_w2_bd = jax.scipy.linalg.block_diag(*head_w2)        # [T*H, sum_l]
    head_b2_stacked = jnp.concatenate(head_b2, axis=1)        # [1, sum_l]
    head_w2_bd_pad = jnp.pad(head_w2_bd, ((0, 0), (0, pad_l - sum_l)))
    head_b2_pad = jnp.pad(head_b2_stacked, ((0, 0), (0, pad_l - sum_l)))

    return dict(
        # reference-layout params
        expert_w=expert_w, expert_b=expert_b,
        gate_w=gate_w, gate_b=gate_b,
        head_w1=head_w1, head_b1=head_b1,
        head_w2=head_w2, head_b2=head_b2,
        # kernel layouts (matmul operands pre-cast to bf16, biases stay f32)
        in_w_fused=in_w_fused.astype(jnp.bfloat16),
        in_b_fused=in_b_fused,
        gate_expand_bd=gate_expand_bd,
        head_w1_bd=head_w1_bd.astype(jnp.bfloat16),
        head_b1_stacked=head_b1_stacked,
        head_w2_bd_pad=head_w2_bd_pad.astype(jnp.bfloat16),
        head_b2_pad=head_b2_pad,
        E=E, U=U, T=T, H=H, sum_labels=sum_l, pad_labels=pad_l,
    )


if __name__ == "__main__":
    # small config: num_feature=32, units=32, num_experts=8, hidden_units=32,
    # num_tasks=2, label_dict=[8, 4]
    B, F, U, E, H = 8, 32, 32, 8, 32
    label_dict = (8, 4)

    key = jax.random.PRNGKey(0)
    kx, kp = jax.random.split(key)
    x = jax.random.normal(kx, (B, F), dtype=jnp.float32)
    params = make_params(kp, F, U, E, H, label_dict)

    out = jax.block_until_ready(mmoe_forward(x, params))
    ref = jax.block_until_ready(mmoe_reference(x, params))

    assert out.shape == (B, sum(label_dict)), out.shape
    # Tolerance vs. the f32 reference reflects the intentional bf16 MXU-operand
    # precision tradeoff (accumulation and all element-wise math remain f32;
    # the softmax reciprocal is Newton-refined and effectively exact).
    max_err = float(jnp.max(jnp.abs(out - ref)))
    assert jnp.allclose(out, ref, rtol=2e-2, atol=2e-2), max_err
    print("KERNEL_OK")
</pallas_src>

<mosaic_0001>
module attributes {stable_mosaic.version = 11 : i64} {
  func.func @mmoe_kernel(%arg0: i32, %arg1: memref<8x32xbf16, #tpu.memory_space<vmem>>, %arg2: memref<32x272xbf16, #tpu.memory_space<vmem>>, %arg3: memref<1x272xf32, #tpu.memory_space<vmem>>, %arg4: memref<16x512xf32, #tpu.memory_space<vmem>>, %arg5: memref<64x64xbf16, #tpu.memory_space<vmem>>, %arg6: memref<1x64xf32, #tpu.memory_space<vmem>>, %arg7: memref<64x128xbf16, #tpu.memory_space<vmem>>, %arg8: memref<1x128xf32, #tpu.memory_space<vmem>>, %arg9: memref<8x128xf32, #tpu.memory_space<vmem>>) attributes {dimension_semantics = [#tpu.dimension_semantics<parallel>], iteration_bounds = array<i64: 1>, scalar_prefetch = 0 : i64, scratch_operands = 0 : i64, tpu.core_type = #tpu.core_type<tc>, window_params = [{transform_indices = @transform_0, window_bounds = array<i64: 8, 32>}, {pipeline_mode = #tpu.pipeline_mode<synchronous>, transform_indices = @transform_1, window_bounds = array<i64: 32, 272>}, {pipeline_mode = #tpu.pipeline_mode<synchronous>, transform_indices = @transform_2, window_bounds = array<i64: 1, 272>}, {pipeline_mode = #tpu.pipeline_mode<synchronous>, transform_indices = @transform_3, window_bounds = array<i64: 16, 512>}, {pipeline_mode = #tpu.pipeline_mode<synchronous>, transform_indices = @transform_4, window_bounds = array<i64: 64, 64>}, {pipeline_mode = #tpu.pipeline_mode<synchronous>, transform_indices = @transform_5, window_bounds = array<i64: 1, 64>}, {pipeline_mode = #tpu.pipeline_mode<synchronous>, transform_indices = @transform_6, window_bounds = array<i64: 64, 128>}, {pipeline_mode = #tpu.pipeline_mode<synchronous>, transform_indices = @transform_7, window_bounds = array<i64: 1, 128>}, {transform_indices = @transform_8, window_bounds = array<i64: 8, 128>}]} {
    %c0 = arith.constant 0 : index
    %c0_0 = arith.constant 0 : index
    %0 = vector.load %arg1[%c0, %c0_0] : memref<8x32xbf16, #tpu.memory_space<vmem>>, vector<8x32xbf16>
    %c0_1 = arith.constant 0 : index
    %c0_2 = arith.constant 0 : index
    %1 = vector.load %arg2[%c0_1, %c0_2] : memref<32x272xbf16, #tpu.memory_space<vmem>>, vector<32x272xbf16>
    %cst = arith.constant dense<0.000000e+00> : vector<8x272xf32>
    %2 = tpu.matmul %0, %1, %cst {dimension_numbers = #tpu.dot_dimension_numbers<[1], [0], [0], [1], [0, 0, 1, 1], [], []>} : vector<8x32xbf16>, vector<32x272xbf16>, vector<8x272xf32> -> vector<8x272xf32>
    %c0_3 = arith.constant 0 : index
    %c0_4 = arith.constant 0 : index
    %3 = vector.load %arg3[%c0_3, %c0_4] : memref<1x272xf32, #tpu.memory_space<vmem>>, vector<1x272xf32>
    %4 = vector.broadcast %3 : vector<1x272xf32> to vector<8x272xf32>
    %5 = arith.addf %2, %4 : vector<8x272xf32>
    %6 = vector.extract_strided_slice %5 {offsets = [0, 0], sizes = [8, 256], strides = [1, 1]} : vector<8x272xf32> to vector<8x256xf32>
    %cst_5 = arith.constant 0.000000e+00 : f32
    %7 = vector.broadcast %cst_5 : f32 to vector<8x256xf32>
    %8 = arith.maximumf %6, %7 : vector<8x256xf32>
    %9 = vector.extract_strided_slice %5 {offsets = [0, 256], sizes = [8, 16], strides = [1, 1]} : vector<8x272xf32> to vector<8x16xf32>
    %10 = vector.extract_strided_slice %9 {offsets = [0, 0], sizes = [8, 8], strides = [1, 1]} : vector<8x16xf32> to vector<8x8xf32>
    %cst_6 = arith.constant dense<0xFF800000> : vector<8xf32>
    %11 = vector.multi_reduction <maximumf>, %10, %cst_6 [1] : vector<8x8xf32> to vector<8xf32>
    %12 = vector.shape_cast %11 : vector<8xf32> to vector<8x1xf32>
    %13 = vector.broadcast %12 : vector<8x1xf32> to vector<8x8xf32>
    %14 = arith.subf %10, %13 : vector<8x8xf32>
    %15 = math.exp %14 : vector<8x8xf32>
    %cst_7 = arith.constant dense<0.000000e+00> : vector<8xf32>
    %16 = vector.multi_reduction <add>, %15, %cst_7 [1] : vector<8x8xf32> to vector<8xf32>
    %17 = vector.shape_cast %16 : vector<8xf32> to vector<8x1xf32>
    %18 = tpu.reciprocal %17 {approx = true} : vector<8x1xf32> -> vector<8x1xf32>
    %19 = arith.mulf %17, %18 : vector<8x1xf32>
    %cst_8 = arith.constant 2.000000e+00 : f32
    %20 = vector.broadcast %cst_8 : f32 to vector<8x1xf32>
    %21 = arith.subf %20, %19 : vector<8x1xf32>
    %22 = arith.mulf %18, %21 : vector<8x1xf32>
    %23 = vector.broadcast %22 : vector<8x1xf32> to vector<8x8xf32>
    %24 = arith.mulf %15, %23 : vector<8x8xf32>
    %25 = vector.extract_strided_slice %9 {offsets = [0, 8], sizes = [8, 8], strides = [1, 1]} : vector<8x16xf32> to vector<8x8xf32>
    %cst_9 = arith.constant dense<0xFF800000> : vector<8xf32>
    %26 = vector.multi_reduction <maximumf>, %25, %cst_9 [1] : vector<8x8xf32> to vector<8xf32>
    %27 = vector.shape_cast %26 : vector<8xf32> to vector<8x1xf32>
    %28 = vector.broadcast %27 : vector<8x1xf32> to vector<8x8xf32>
    %29 = arith.subf %25, %28 : vector<8x8xf32>
    %30 = math.exp %29 : vector<8x8xf32>
    %cst_10 = arith.constant dense<0.000000e+00> : vector<8xf32>
    %31 = vector.multi_reduction <add>, %30, %cst_10 [1] : vector<8x8xf32> to vector<8xf32>
    %32 = vector.shape_cast %31 : vector<8xf32> to vector<8x1xf32>
    %33 = tpu.reciprocal %32 {approx = true} : vector<8x1xf32> -> vector<8x1xf32>
    %34 = arith.mulf %32, %33 : vector<8x1xf32>
    %cst_11 = arith.constant 2.000000e+00 : f32
    %35 = vector.broadcast %cst_11 : f32 to vector<8x1xf32>
    %36 = arith.subf %35, %34 : vector<8x1xf32>
    %37 = arith.mulf %33, %36 : vector<8x1xf32>
    %38 = vector.broadcast %37 : vector<8x1xf32> to vector<8x8xf32>
    %39 = arith.mulf %30, %38 : vector<8x8xf32>
    %40 = tpu.concatenate %24, %39 in 1 : vector<8x8xf32>, vector<8x8xf32> -> vector<8x16xf32>
    %c0_12 = arith.constant 0 : index
    %c0_13 = arith.constant 0 : index
    %41 = vector.load %arg4[%c0_12, %c0_13] : memref<16x512xf32, #tpu.memory_space<vmem>>, vector<16x512xf32>
    %cst_14 = arith.constant dense<0.000000e+00> : vector<8x512xf32>
    %42 = tpu.matmul %40, %41, %cst_14 {dimension_numbers = #tpu.dot_dimension_numbers<[1], [0], [0], [1], [0, 0, 1, 1], [], []>} : vector<8x16xf32>, vector<16x512xf32>, vector<8x512xf32> -> vector<8x512xf32>
    %43 = vector.extract_strided_slice %42 {offsets = [0, 0], sizes = [8, 256], strides = [1, 1]} : vector<8x512xf32> to vector<8x256xf32>
    %44 = arith.mulf %8, %43 : vector<8x256xf32>
    %45 = vector.extract_strided_slice %44 {offsets = [0, 0], sizes = [8, 128], strides = [1, 1]} : vector<8x256xf32> to vector<8x128xf32>
    %46 = vector.extract_strided_slice %44 {offsets = [0, 128], sizes = [8, 128], strides = [1, 1]} : vector<8x256xf32> to vector<8x128xf32>
    %47 = arith.addf %45, %46 : vector<8x128xf32>
    %c64_i32 = arith.constant 64 : i32
    %48 = tpu.dynamic_rotate %47 by %c64_i32 dim 1 : vector<8x128xf32>, i32 -> vector<8x128xf32>
    %49 = arith.addf %47, %48 : vector<8x128xf32>
    %c96_i32 = arith.constant 96 : i32
    %50 = tpu.dynamic_rotate %49 by %c96_i32 dim 1 : vector<8x128xf32>, i32 -> vector<8x128xf32>
    %51 = arith.addf %49, %50 : vector<8x128xf32>
    %52 = vector.extract_strided_slice %51 {offsets = [0, 0], sizes = [8, 32], strides = [1, 1]} : vector<8x128xf32> to vector<8x32xf32>
    %53 = vector.extract_strided_slice %42 {offsets = [0, 256], sizes = [8, 256], strides = [1, 1]} : vector<8x512xf32> to vector<8x256xf32>
    %54 = arith.mulf %8, %53 : vector<8x256xf32>
    %55 = vector.extract_strided_slice %54 {offsets = [0, 0], sizes = [8, 128], strides = [1, 1]} : vector<8x256xf32> to vector<8x128xf32>
    %56 = vector.extract_strided_slice %54 {offsets = [0, 128], sizes = [8, 128], strides = [1, 1]} : vector<8x256xf32> to vector<8x128xf32>
    %57 = arith.addf %55, %56 : vector<8x128xf32>
    %c64_i32_15 = arith.constant 64 : i32
    %58 = tpu.dynamic_rotate %57 by %c64_i32_15 dim 1 : vector<8x128xf32>, i32 -> vector<8x128xf32>
    %59 = arith.addf %57, %58 : vector<8x128xf32>
    %c96_i32_16 = arith.constant 96 : i32
    %60 = tpu.dynamic_rotate %59 by %c96_i32_16 dim 1 : vector<8x128xf32>, i32 -> vector<8x128xf32>
    %61 = arith.addf %59, %60 : vector<8x128xf32>
    %62 = vector.extract_strided_slice %61 {offsets = [0, 0], sizes = [8, 32], strides = [1, 1]} : vector<8x128xf32> to vector<8x32xf32>
    %63 = tpu.concatenate %52, %62 in 1 : vector<8x32xf32>, vector<8x32xf32> -> vector<8x64xf32>
    %64 = arith.truncf %63 : vector<8x64xf32> to vector<8x64xbf16>
    %c0_17 = arith.constant 0 : index
    %c0_18 = arith.constant 0 : index
    %65 = vector.load %arg5[%c0_17, %c0_18] : memref<64x64xbf16, #tpu.memory_space<vmem>>, vector<64x64xbf16>
    %cst_19 = arith.constant dense<0.000000e+00> : vector<8x64xf32>
    %66 = tpu.matmul %64, %65, %cst_19 {dimension_numbers = #tpu.dot_dimension_numbers<[1], [0], [0], [1], [0, 0, 1, 1], [], []>} : vector<8x64xbf16>, vector<64x64xbf16>, vector<8x64xf32> -> vector<8x64xf32>
    %c0_20 = arith.constant 0 : index
    %c0_21 = arith.constant 0 : index
    %67 = vector.load %arg6[%c0_20, %c0_21] : memref<1x64xf32, #tpu.memory_space<vmem>>, vector<1x64xf32>
    %68 = vector.broadcast %67 : vector<1x64xf32> to vector<8x64xf32>
    %69 = arith.addf %66, %68 : vector<8x64xf32>
    %cst_22 = arith.constant 0.000000e+00 : f32
    %70 = vector.broadcast %cst_22 : f32 to vector<8x64xf32>
    %71 = arith.maximumf %69, %70 : vector<8x64xf32>
    %72 = arith.truncf %71 : vector<8x64xf32> to vector<8x64xbf16>
    %c0_23 = arith.constant 0 : index
    %c0_24 = arith.constant 0 : index
    %73 = vector.load %arg7[%c0_23, %c0_24] : memref<64x128xbf16, #tpu.memory_space<vmem>>, vector<64x128xbf16>
    %cst_25 = arith.constant dense<0.000000e+00> : vector<8x128xf32>
    %74 = tpu.matmul %72, %73, %cst_25 {dimension_numbers = #tpu.dot_dimension_numbers<[1], [0], [0], [1], [0, 0, 1, 1], [], []>} : vector<8x64xbf16>, vector<64x128xbf16>, vector<8x128xf32> -> vector<8x128xf32>
    %c0_26 = arith.constant 0 : index
    %c0_27 = arith.constant 0 : index
    %75 = vector.load %arg8[%c0_26, %c0_27] : memref<1x128xf32, #tpu.memory_space<vmem>>, vector<1x128xf32>
    %76 = vector.broadcast %75 : vector<1x128xf32> to vector<8x128xf32>
    %77 = arith.addf %74, %76 : vector<8x128xf32>
    %c0_28 = arith.constant 0 : index
    %c0_29 = arith.constant 0 : index
    %78 = vector.load %arg9[%c0_28, %c0_29] : memref<8x128xf32, #tpu.memory_space<vmem>>, vector<8x128xf32>
    tpu.vector_store %arg9[%c0_28, %c0_29], %77 {strides = array<i32>} : memref<8x128xf32, #tpu.memory_space<vmem>>, vector<8x128xf32>,
    return
  }
  func.func @transform_0(%arg0: i32) -> (i32, i32) {
    %c0_i32 = arith.constant 0 : i32
    %c0_i32_0 = arith.constant 0 : i32
    return %arg0, %c0_i32 : i32, i32
  }
  func.func @transform_1(%arg0: i32) -> (i32, i32) {
    %c0_i32 = arith.constant 0 : i32
    %c0_i32_0 = arith.constant 0 : i32
    %c0_i32_1 = arith.constant 0 : i32
    return %c0_i32, %c0_i32_0 : i32, i32
  }
  func.func @transform_2(%arg0: i32) -> (i32, i32) {
    %c0_i32 = arith.constant 0 : i32
    %c0_i32_0 = arith.constant 0 : i32
    %c0_i32_1 = arith.constant 0 : i32
    return %c0_i32, %c0_i32_0 : i32, i32
  }
  func.func @transform_3(%arg0: i32) -> (i32, i32) {
    %c0_i32 = arith.constant 0 : i32
    %c0_i32_0 = arith.constant 0 : i32
    %c0_i32_1 = arith.constant 0 : i32
    return %c0_i32, %c0_i32_0 : i32, i32
  }
  func.func @transform_4(%arg0: i32) -> (i32, i32) {
    %c0_i32 = arith.constant 0 : i32
    %c0_i32_0 = arith.constant 0 : i32
    %c0_i32_1 = arith.constant 0 : i32
    return %c0_i32, %c0_i32_0 : i32, i32
  }
  func.func @transform_5(%arg0: i32) -> (i32, i32) {
    %c0_i32 = arith.constant 0 : i32
    %c0_i32_0 = arith.constant 0 : i32
    %c0_i32_1 = arith.constant 0 : i32
    return %c0_i32, %c0_i32_0 : i32, i32
  }
  func.func @transform_6(%arg0: i32) -> (i32, i32) {
    %c0_i32 = arith.constant 0 : i32
    %c0_i32_0 = arith.constant 0 : i32
    %c0_i32_1 = arith.constant 0 : i32
    return %c0_i32, %c0_i32_0 : i32, i32
  }
  func.func @transform_7(%arg0: i32) -> (i32, i32) {
    %c0_i32 = arith.constant 0 : i32
    %c0_i32_0 = arith.constant 0 : i32
    %c0_i32_1 = arith.constant 0 : i32
    return %c0_i32, %c0_i32_0 : i32, i32
  }
  func.func @transform_8(%arg0: i32) -> (i32, i32) {
    %c0_i32 = arith.constant 0 : i32
    %c0_i32_0 = arith.constant 0 : i32
    return %arg0, %c0_i32 : i32, i32
  }
}

</mosaic_0001>

<bundles_post_ra>
// kernel: tpu_custom_call.1
= control target key start
LH: loop header
LB: loop body
LE: loop exit
PB: predicated region body
PF: predicated region fallthrough
CT: control target
= control target key end

     0   :  { %13 = vsyncpa [#allocation3], 0  ;;  %s1093_s0 = inlined_call_operand.hbm [shape: bf16[8,32], index: 0, kind: input, shape index: {}]   ;;  %s1094_s1 = inlined_call_operand.hbm [shape: bf16[32,272], index: 1, kind: input, shape index: {}]   ;;  %s1095_s2 = inlined_call_operand.vmem [shape: f32[1,272], index: 2, kind: input, shape index: {}]   ;;  %s1096_s3 = inlined_call_operand.hbm [shape: f32[16,512], index: 3, kind: input, shape index: {}]   ;;  %s1097_s4 = inlined_call_operand.hbm [shape: bf16[64,64], index: 4, kind: input, shape index: {}]   ;;  %s1098_s5 = inlined_call_operand.vmem [shape: f32[1,64], index: 5, kind: input, shape index: {}]   ;;  %s1099_s6 = inlined_call_operand.hbm [shape: bf16[64,128], index: 6, kind: input, shape index: {}]   ;;  %s1100_s7 = inlined_call_operand.vmem [shape: f32[1,128], index: 7, kind: input, shape index: {}]   ;;  %s1101_s8 = inlined_call_operand.hbm [shape: f32[8,128], index: 8, kind: output, shape index: {}]  }
   0x1   :  { %14 = vsyncpa [#allocation6], 0 }
   0x2   :  { %15 = vsyncpa [#allocation9], 0 }
   0x3   :  { %16 = vsyncpa [#allocation4], 0  ;;  %s896_s27 = smov [#allocation5]   ;;  %s756_s9 = scalar_lea.hbm %s1094_s1, 768 }
   0x4   :  { %s32_s28 = sshll.u32 %s896_s27, 4  ;;  %p757_p0 = scmp.ne.s32.totalorder %s1094_s1, %s756_s9  ;;  %s33_s28 = int_to_ptr.vmem [resolvable:$true] %s32_s28 }
   0x5   :  { %p760_p1 = scmp.lt.u32.totalorder %s756_s9, %s1094_s1 }
   0x7   :  { %p762_p2 = pnand %p760_p1, %p757_p0 }
   0x9   :  { %765 = shalt.err (!%p762_p2)
}
   0xa   :  { %s766_s14 = scalar_lea.vmem %s33_s28, 768  ;;  %p771_p4 = scmp.lt.s32.totalorder %s33_s28, %s33_s28 }
   0xb   :  { %p767_p3 = scmp.ne.s32.totalorder %s33_s28, %s766_s14  ;;  %p772_p5 = scmp.lt.s32.totalorder %s766_s14, %s766_s14 }
   0xd   :  { %p773_p6 = por %p772_p5, %p771_p4 }
   0xf   :  { %p774_p7 = pnand %p773_p6, %p767_p3 }
  0x11   :  { %777 = shalt.err (!%p774_p7)
}
  0x12   :  { %s897_s15 = smov 192   ;;  %s898_s16 = smov 12  }
  0x13   :  { %38 = dma.hbm_to_vmem [thread:$0]  %s1094_s1, 768, %s33_s28, [#allocation6], %s897_s15, %s897_s15, %s898_s16  }
  0x14   :  { %s899_s19 = smov [#allocation8]   ;;  %s778_s23 = scalar_lea.hbm %s1097_s4, 512 }
  0x15   :  { %s58_s20 = sshll.u32 %s899_s19, 4  ;;  %p779_p8 = scmp.ne.s32.totalorder %s1097_s4, %s778_s23  ;;  %s59_s20 = int_to_ptr.vmem [resolvable:$true] %s58_s20 }
  0x16   :  { %p782_p9 = scmp.lt.u32.totalorder %s778_s23, %s1097_s4 }
  0x18   :  { %p784_p10 = pnand %p782_p9, %p779_p8 }
  0x1a   :  { %787 = shalt.err (!%p784_p10)
}
  0x1b   :  { %s788_s29 = scalar_lea.vmem %s59_s20, 512  ;;  %p793_p12 = scmp.lt.s32.totalorder %s59_s20, %s59_s20 }
  0x1c   :  { %p789_p11 = scmp.ne.s32.totalorder %s59_s20, %s788_s29  ;;  %p794_p13 = scmp.lt.s32.totalorder %s788_s29, %s788_s29 }
  0x1e   :  { %p795_p0 = por %p794_p13, %p793_p12 }
  0x20   :  { %p796_p1 = pnand %p795_p0, %p789_p11 }
  0x22   :  { %799 = shalt.err (!%p796_p1)
}
  0x23   :  { %s900_s1 = smov 64   ;;  %s901_s28 = smov 4  }
  0x24   :  { %64 = dma.hbm_to_vmem [thread:$0]  %s1097_s4, 512, %s59_s20, [#allocation9], %s900_s1, %s900_s1, %s901_s28  }
  0x25   :  { %s902_s10 = smov [#allocation2]   ;;  %s903_s12 = smov [#allocation7]  }
  0x26   :  { %s23_s11 = sshll.u32 %s902_s10, 4  ;;  %s46_s13 = sshll.u32 %s903_s12, 4  ;;  %s24_s11 = int_to_ptr.vmem [resolvable:$true] %s23_s11  ;;  %s985_s13 = int_to_ptr.vmem [resolvable:$true] %s46_s13 }
  0x27   :  { %s800_s16 = scalar_lea.hbm %s1093_s0, 64 }
  0x28   :  { %p801_p2 = scmp.ne.s32.totalorder %s1093_s0, %s800_s16  ;;  %p804_p3 = scmp.lt.u32.totalorder %s800_s16, %s1093_s0 }
  0x2a   :  { %p806_p4 = pnand %p804_p3, %p801_p2 }
  0x2c   :  { %809 = shalt.err (!%p806_p4)
}
  0x2d   :  { %s810_s4 = scalar_lea.vmem %s24_s11, 64  ;;  %p815_p6 = scmp.lt.s32.totalorder %s24_s11, %s24_s11 }
  0x2e   :  { %p811_p5 = scmp.ne.s32.totalorder %s24_s11, %s810_s4  ;;  %p816_p7 = scmp.lt.s32.totalorder %s810_s4, %s810_s4 }
  0x30   :  { %p817_p8 = por %p816_p7, %p815_p6 }
  0x32   :  { %p818_p9 = pnand %p817_p8, %p811_p5 }
  0x34   :  { %821 = shalt.err (!%p818_p9)
}
  0x35   :  { %26 = dma.hbm_to_vmem [thread:$0]  %s1093_s0, 64, %s24_s11, [#allocation3]  }
  0x36   :  { %s822_s25 = scalar_lea.hbm %s1096_s3, 1024 }
  0x37   :  { %p823_p10 = scmp.ne.s32.totalorder %s1096_s3, %s822_s25  ;;  %p826_p11 = scmp.lt.u32.totalorder %s822_s25, %s1096_s3 }
  0x39   :  { %p828_p12 = pnand %p826_p11, %p823_p10 }
  0x3b   :  { %831 = shalt.err (!%p828_p12)
}
  0x3c   :  { %s832_s9 = scalar_lea.vmem %s985_s13, 1024  ;;  %p837_p0 = scmp.lt.s32.totalorder %s985_s13, %s985_s13 }
  0x3d   :  { %p833_p13 = scmp.ne.s32.totalorder %s985_s13, %s832_s9  ;;  %p838_p1 = scmp.lt.s32.totalorder %s832_s9, %s832_s9 }
  0x3f   :  { %p839_p2 = por %p838_p1, %p837_p0 }
  0x41   :  { %p840_p3 = pnand %p839_p2, %p833_p13 }
  0x43   :  { %843 = shalt.err (!%p840_p3)
}
  0x44   :  { %s904_s0 = smov 512   ;;  %s905_s10 = smov 32  }
  0x45   :  { %52 = dma.hbm_to_vmem [thread:$0]  %s1096_s3, 1024, %s985_s13, [#allocation6], %s904_s0, %s904_s0, %s905_s10  }
  0x46   :  { %s906_s14 = smov [#allocation10]   ;;  %s844_s18 = scalar_lea.hbm %s1099_s6, 512 }
  0x47   :  { %s72_s15 = sshll.u32 %s906_s14, 4  ;;  %p845_p4 = scmp.ne.s32.totalorder %s1099_s6, %s844_s18  ;;  %s73_s15 = int_to_ptr.vmem [resolvable:$true] %s72_s15 }
  0x48   :  { %p848_p5 = scmp.lt.u32.totalorder %s844_s18, %s1099_s6 }
  0x4a   :  { %p850_p6 = pnand %p848_p5, %p845_p4 }
  0x4c   :  { %853 = shalt.err (!%p850_p6)
}
  0x4d   :  { %s854_s22 = scalar_lea.vmem %s73_s15, 512  ;;  %p859_p8 = scmp.lt.s32.totalorder %s73_s15, %s73_s15 }
  0x4e   :  { %p855_p7 = scmp.ne.s32.totalorder %s73_s15, %s854_s22  ;;  %p860_p9 = scmp.lt.s32.totalorder %s854_s22, %s854_s22 }
  0x50   :  { %p861_p10 = por %p860_p9, %p859_p8 }
  0x52   :  { %p862_p11 = pnand %p861_p10, %p855_p7 }
  0x54   :  { %865 = shalt.err (!%p862_p11)
}
  0x55   :  { %78 = dma.hbm_to_vmem [thread:$0]  %s1099_s6, 512, %s73_s15, [#allocation9], %s900_s1, %s900_s1, %s901_s28  }
  0x56   :  { %888 = dma.done.wait [#allocation3], 64  }
  0x57   :  { %889 = vsyncadd [#allocation3], 4294967232 }
  0x58   :  { %890 = dma.done.wait [#allocation6], 1792  }
  0x59   :  { %891 = vsyncadd [#allocation6], 4294965504 }
  0x5a   :  { %892 = dma.done.wait [#allocation9], 1024  }
  0x5b   :  { %893 = vsyncadd [#allocation9], 4294966272  ;;  %v907_v0 = vmov 0.0   ;;  %vm908_vm0 = vmmov 0   ;;  %v732_v1 = vld [vmem:[#allocation5 + $0x8] ss:$12 sps:$4 sm:$0xff]   ;;  %v108_v4 = vlaneseq }
  0x5c   :  { %675 = vmatprep.subr.bf16.mxu1 %v907_v0  ;;  %679 = vmatprep.mubr.msk.bf16.mxu1 %vm908_vm0, %v907_v0  ;;  %v733_v2 = vld [vmem:[#allocation5 + $0x20] ss:$12 sps:$4 sm:$0xff]   ;;  %vm155_vm1 = vcmask 261120   ;;  %v97_v3 = vld [vmem:[#allocation2] sm:$0xf]  ;;  %vm257_vm2 = vcmask 130112  }
  0x5d   :  { %676 = vmatpush3.bf16.msra.mxu1 %v732_v1  ;;  %v1038_v5 = vshrl.u32 %v108_v4, 7  ;;  %v1044_v7 = vld [vmem:[%s1095_s2] sm:$0x7]  ;;  %vm242_vm3 = vcmask 64512   ;;  %s909_s2 = smov 120   ;;  %v910_v31 = vmov 0  }
  0x5e   :  { %677 = vmatprep.subr.bf16.mxu1 %v907_v0  ;;  %v734_v27 = vld [vmem:[#allocation5 + $0x4] ss:$12 sps:$4 sm:$0xff]   ;;  %v736_v28 = vld [vmem:[#allocation5] ss:$12 sps:$4 sm:$0xff]   ;;  %v737_v29 = vld [vmem:[#allocation5 + $0x1c] ss:$12 sps:$4 sm:$0xff]   ;;  %191 = vmatprep.mubr.bf16.mxu0 %v910_v31 }
  0x5f   :  { %v118_v6 = vsub.s32 2, %v1038_v5  ;;  %159 = vmatprep.subr.bf16.mxu0 %v734_v27  ;;  %v739_v30 = vld [vmem:[#allocation5 + $0x18] ss:$12 sps:$4 sm:$0xff]   ;;  %v280_v32 = vld [vmem:[#allocation7 + $0x18] sm:$0xff]  ;;  %v277_v41 = vld [vmem:[#allocation7] sm:$0xff]  ;;  %vm285_vm4 = vcmask 130048  }
  0x60   :  { %160 = vmatpush1.bf16.msra.mxu0 %v736_v28  ;;  %v284_v33 = vld [vmem:[#allocation7 + $0x38] sm:$0xff]  ;;  %v278_v34 = vld [vmem:[#allocation7 + $0x8] sm:$0xff]  ;;  %v279_v36 = vld [vmem:[#allocation7 + $0x10] sm:$0xff]  ;;  %v110_v61 = vsub.s32 0, %v1038_v5  ;;  %v114_v62 = vsub.s32 1, %v1038_v5  ;;  %s911_s23 = smov 96  }
  0x61   :  { %678 = vmatpush3.bf16.msra.mxu1 %v733_v2  ;;  %v119_v8 = vrot.slane %v1044_v7, %v118_v6  ;;  %161 = vmatprep.subr.bf16.mxu0 %v737_v29  ;;  %v711_v35 = vpack.c.bf16 %v284_v33, %v280_v32  ;;  %v283_v37 = vld [vmem:[#allocation7 + $0x30] sm:$0xff]  ;;  %v282_v38 = vld [vmem:[#allocation7 + $0x28] sm:$0xff]  ;;  %v281_v42 = vld [vmem:[#allocation7 + $0x20] sm:$0xff]  ;;  %vm494_vm5 = vcmask 523264   ;;  %s912_s27 = smov [#allocation11]  }
  0x62   :  { %v713_v39 = vpack.c.bf16 %v283_v37, %v279_v36  ;;  %v707_v40 = vpack.c.bf16 %v282_v38, %v278_v34  ;;  %v709_v43 = vpack.c.bf16 %v281_v42, %v277_v41  ;;  %v111_v63 = vrot.slane %v1044_v7, %v110_v61  ;;  %v740_v5 = vld [vmem:[#allocation8] sm:$0xff]   ;;  %v746_v33 = vld [vmem:[#allocation10 + $0x10] sm:$0xff]   ;;  %v747_v34 = vld [vmem:[#allocation10 + $0x18] sm:$0xff]   ;;  %s629_s29 = sshll.u32 %s912_s27, 4  ;;  %s630_s29 = int_to_ptr.vmem [resolvable:$true] %s629_s29 }
  0x63   :  { %712 = vmatprep.subr.bf16.mxu1 %v711_v35  ;;  %v115_v1 = vrot.slane %v1044_v7, %v114_v62  ;;  %v741_v7 = vld [vmem:[#allocation8 + $0x8] sm:$0xff]   ;;  %p871_p13 = scmp.lt.s32.totalorder %s630_s29, %s630_s29 }
  0x64   :  { %680 = vmatmul.mubr.msk.bf16.vlgmr.msra.gmra.mrb[0].mxu1 %vm155_vm1, %v97_v3  ;;  %162 = vmatpush1.bf16.msra.mxu0 %v739_v30  ;;  %v650_v35 = vld [vmem:[%s1098_s5] ss:$0 sm:$0xff]  ;;  %s866_s5 = scalar_lea.vmem %s630_s29, 128 }
  0x65   :  { %424 = vmatprep.mubr.f32.mxu1 %v907_v0  ;;  %714 = vmatpush1.bf16.msra.mxu1 %v713_v39  ;;  %p867_p12 = scmp.ne.s32.totalorder %s630_s29, %s866_s5  ;;  %p872_p0 = scmp.lt.s32.totalorder %s866_s5, %s866_s5 }
  0x66   :  { %708 = vmatprep.subr.bf16.mxu0 %v707_v40  ;;  %695 = vmatprep.subr.bf16.mxu1 %v907_v0 }
  0x67   :  { %646 = vmatmul.mubr.msk.bf16.vlgmr.msra.gmra.mrb[0].mxu0 %vm155_vm1, %v97_v3  ;;  %p873_p1 = por %p872_p0, %p871_p13 }
  0x68   :  { %353 = vmatprep.mubr.f32.mxu0 %v907_v0  ;;  %710 = vmatpush1.bf16.msra.mxu0 %v709_v43  ;;  %v656_v43 = vld [vmem:[%s1100_s7] ss:$0 sm:$0xff] }
  0x69   :  { %683 = vmatprep.subr.bf16.mxu0 %v907_v0  ;;  %p874_p2 = pnand %p873_p1, %p867_p12 }
 0x137   :  { %v234_v9 = vpop.f32.mrb[0].mxu1 }
 0x138   :  { %v235_v10 = vadd.f32 %v234_v9, %v119_v8  ;;  %v681_v11 = vpop.f32.mrb[1].mxu1 }
 0x139   :  { %v237_v12 = vpop.f32.mrb[2].mxu1 }
 0x13a   :  { %v682_v13 = vpop.f32.mrb[3].mxu1  ;;  %v258_v14 = vsel %vm257_vm2, %v235_v10, -inf  ;;  %v243_v15 = vsel %vm242_vm3, %v235_v10, -inf  ;;  %v193_v57 = vpop.f32.mrb[0].mxu0 }
 0x13b   :  { %259 = vmax.xlane.f32.xlu0 %v258_v14  ;;  %v195_v58 = vpop.f32.mrb[1].mxu0  ;;  %v194_v2 = vadd.f32 %v193_v57, %v111_v63 }
 0x13c   :  { %v197_v59 = vpop.f32.mrb[2].mxu0  ;;  %v196_v3 = vadd.f32 %v195_v58, %v115_v1 }
 0x13d   :  { %v198_v60 = vpop.f32.mrb[3].mxu0  ;;  %v240_v4 = vmax.f32 %v194_v2, 0.0 }
 0x13e   :  { %v241_v6 = vmax.f32 %v196_v3, 0.0 }
 0x13f   :  { %244 = vmax.xlane.f32.xlu0 %v243_v15 }
 0x1c8   :  { %v260_v16 = vpop.xlane.xlu0 %259 }
 0x1c9   :  { %v261_v17 = vsub.f32 %v235_v10, %v260_v16 }
 0x1cb   :  { %v262_v18 = vmul.f32 1.442695, %v261_v17 }
 0x1cc   :  { %v245_v20 = vpop.xlane.xlu0 %244 }
 0x1cd   :  { %748 = vpow2.f32 %v262_v18  ;;  %v246_v21 = vsub.f32 %v235_v10, %v245_v20 }
 0x1cf   :  { %v247_v22 = vmul.f32 1.442695, %v246_v21 }
 0x1d1   :  { %750 = vpow2.f32 %v247_v22 }
 0x1d7   :  { %v749_v19 = vpop.eup %748 }
 0x1d8   :  { %265 = vrot.lane.b32.xlu1 %v749_v19, %s909_s2 }
 0x1db   :  { %v751_v23 = vpop.eup %750 }
 0x1dc   :  { %v249_v24 = vsel %vm242_vm3, %v751_v23, 0.0 }
 0x1fc   :  { %250 = vadd.xlane.f32.xlu1 %v249_v24  ;;  %v744_v24 = vld [vmem:[#allocation10] sm:$0xff]  }
 0x24a   :  { %v266_v25 = vpop.permute.xlu1 %265 }
 0x24b   :  { %v268_v26 = vsel %vm242_vm3, %v266_v25, 0.0  ;;  %v745_v25 = vld [vmem:[#allocation10 + $0x8] sm:$0xff]  }
 0x24c   :  { %269 = vadd.xlane.f32.xlu0 %v268_v26 }
 0x289   :  { %v251_v44 = vpop.xlane.xlu1 %250 }
 0x28a   :  { %752 = vrcp.f32 %v251_v44 }
 0x294   :  { %v753_v46 = vpop.eup %752 }
 0x295   :  { %v253_v47 = vmul.f32 %v753_v46, %v251_v44 }
 0x297   :  { %v254_v48 = vsub.f32 2.0, %v253_v47 }
 0x299   :  { %v255_v51 = vmul.f32 %v753_v46, %v254_v48 }
 0x29b   :  { %v256_v54 = vmul.f32 %v751_v23, %v255_v51  ;;  %v743_v23 = vld [vmem:[#allocation8 + $0x18] sm:$0xff]  }
 0x2d9   :  { %v270_v45 = vpop.xlane.xlu0 %269 }
 0x2da   :  { %754 = vrcp.f32 %v270_v45 }
 0x2e4   :  { %v755_v49 = vpop.eup %754 }
 0x2e5   :  { %v272_v50 = vmul.f32 %v755_v49, %v270_v45 }
 0x2e7   :  { %v273_v52 = vsub.f32 2.0, %v272_v50 }
 0x2e9   :  { %v274_v53 = vmul.f32 %v755_v49, %v273_v52 }
 0x2eb   :  { %v275_v55 = vmul.f32 %v749_v19, %v274_v53  ;;  %v742_v19 = vld [vmem:[#allocation8 + $0x10] sm:$0xff]  }
 0x2ed   :  { %v276_v56 = vsel %vm242_vm3, %v256_v54, %v275_v55 }
 0x2ee   :  { %648 = vmatmul.mubr.msk.f32.vlgmr.msra.gmra.mrb[4].mxu0 %vm285_vm4, %v276_v56  ;;  %649 = vmatmul.mubr.msk.f32.vlgmr.msra.gmra.mrb[4].mxu1 %vm285_vm4, %v276_v56 }
 0x2ef   :  { %691 = vmatprep.mubr.msk.bf16.mxu0 %vm908_vm0, %v907_v0  ;;  %703 = vmatprep.mubr.msk.bf16.mxu1 %vm908_vm0, %v907_v0 }
 0x2f0   :  { %684 = vmatpush3.bf16.msra.mxu0 %v740_v5  ;;  %696 = vmatpush3.bf16.msra.mxu1 %v744_v24 }
 0x2f1   :  { %685 = vmatprep.subr.bf16.mxu0 %v907_v0  ;;  %697 = vmatprep.subr.bf16.mxu1 %v907_v0 }
 0x2f4   :  { %686 = vmatpush3.bf16.msra.mxu0 %v741_v7  ;;  %698 = vmatpush3.bf16.msra.mxu1 %v745_v25 }
 0x2f5   :  { %687 = vmatprep.subr.bf16.mxu0 %v907_v0  ;;  %699 = vmatprep.subr.bf16.mxu1 %v907_v0 }
 0x2f8   :  { %688 = vmatpush3.bf16.msra.mxu0 %v742_v19  ;;  %700 = vmatpush3.bf16.msra.mxu1 %v746_v33 }
 0x2f9   :  { %689 = vmatprep.subr.bf16.mxu0 %v907_v0  ;;  %701 = vmatprep.subr.bf16.mxu1 %v907_v0 }
 0x2fc   :  { %690 = vmatpush3.bf16.msra.mxu0 %v743_v23  ;;  %702 = vmatpush3.bf16.msra.mxu1 %v747_v34 }
 0x3c1   :  { %v355_v8 = vpop.f32.mrb[4].mxu0  ;;  %v426_v9 = vpop.f32.mrb[4].mxu1 }
 0x3c2   :  { %v431_v10 = vmul.f32 %v355_v8, %v240_v4  ;;  %v440_v11 = vmul.f32 %v426_v9, %v240_v4  ;;  %v357_v12 = vpop.f32.mrb[5].mxu0  ;;  %v428_v13 = vpop.f32.mrb[5].mxu1 }
 0x3c3   :  { %v432_v14 = vmul.f32 %v357_v12, %v241_v6  ;;  %v441_v15 = vmul.f32 %v428_v13, %v241_v6 }
 0x3c5   :  { %v442_v16 = vadd.f32 %v441_v15, %v440_v11  ;;  %v433_v17 = vadd.f32 %v432_v14, %v431_v10 }
 0x3c7   :  { %443 = vrot.lane.b32.xlu0 %v442_v16, %s900_s1 }
 0x3cb   :  { %434 = vrot.lane.b32.xlu0 %v433_v17, %s900_s1 }
 0x439   :  { %v444_v18 = vpop.permute.xlu0 %443 }
 0x43a   :  { %v445_v20 = vadd.f32 %v444_v18, %v442_v16 }
 0x43c   :  { %446 = vrot.lane.b32.xlu0 %v445_v20, %s911_s23 }
 0x43d   :  { %v435_v21 = vpop.permute.xlu0 %434 }
 0x43e   :  { %v436_v22 = vadd.f32 %v435_v21, %v433_v17 }
 0x440   :  { %437 = vrot.lane.b32.xlu1 %v436_v22, %s911_s23 }
 0x4ae   :  { %v447_v26 = vpop.permute.xlu0 %446 }
 0x4af   :  { %v448_v27 = vadd.f32 %v447_v26, %v445_v20 }
 0x4b1   :  { %450 = vrot.lane.b32.xlu0 %v448_v27, %s905_s10 }
 0x4b2   :  { %v438_v28 = vpop.permute.xlu1 %437 }
 0x4b3   :  { %v439_v29 = vadd.f32 %v438_v28, %v436_v22 }
 0x523   :  { %v451_v30 = vpop.permute.xlu0 %450 }
 0x524   :  { %v453_v31 = vsel %vm155_vm1, %v439_v29, %v451_v30 }
 0x525   :  { %v454_v32 = vpack.c.bf16 %v453_v31, %v453_v31 }
 0x527   :  { %692 = vmatmul.mubr.msk.bf16.vlgmr.msra.gmra.mrb[8].mxu0 %vm494_vm5, %v454_v32 }
 0x5fa   :  { %v532_v36 = vpop.f32.mrb[8].mxu0 }
 0x5fb   :  { %v533_v37 = vadd.f32 %v650_v35, %v532_v36  ;;  %v693_v38 = vpop.f32.mrb[9].mxu0 }
 0x5fc   :  { %v535_v39 = vpop.f32.mrb[10].mxu0 }
 0x5fd   :  { %v538_v40 = vmax.f32 %v533_v37, 0.0  ;;  %v694_v41 = vpop.f32.mrb[11].mxu0 }
 0x5ff   :  { %v539_v42 = vpack.c.bf16 %v538_v40, %v538_v40 }
 0x601   :  { %704 = vmatmul.mubr.msk.bf16.vlgmr.msra.gmra.mrb[8].mxu1 %vm494_vm5, %v539_v42 }
 0x6d4   :  { %v616_v0 = vpop.f32.mrb[8].mxu1 }
 0x6d5   :  { %v617_v44 = vadd.f32 %v656_v43, %v616_v0  ;;  %v705_v45 = vpop.f32.mrb[9].mxu1 }
 0x6d6   :  { %v619_v46 = vpop.f32.mrb[10].mxu1 }
 0x6d7   :  { %622 = vst [vmem:[#allocation11] sm:$0xff] %v617_v44  ;;  %v706_v47 = vpop.f32.mrb[11].mxu1 }
 0x6d8   :  { %877 = shalt.err (!%p874_p2)
}
 0x6d9   :  { %s878_s7 = scalar_lea.hbm %s1101_s8, 128 }
 0x6da   :  { %p879_p3 = scmp.ne.s32.totalorder %s1101_s8, %s878_s7  ;;  %p882_p4 = scmp.lt.u32.totalorder %s878_s7, %s1101_s8 }
 0x6dc   :  { %p884_p5 = pnand %p882_p4, %p879_p3 }
 0x6de   :  { %887 = shalt.err (!%p884_p5)
}
 0x6df   :  { %632 = dma.vmem_to_hbm [thread:$0]  %s630_s29, 128, %s1101_s8, [#allocation4]  }
 0x6e0   :  { %894 = dma.done.wait [#allocation4], 128  }
 0x6e1   :  { %895 = vsyncadd [#allocation4], 4294967168 }
 0x6e2   :  { %636 = vsyncpa [#allocation3], 1 }
 0x6e3   :  { %637 = vsyncpa [#allocation6], 1 }
 0x6e4   :  { %638 = vsyncpa [#allocation9], 1 }
 0x6e5   :  { %639 = vsyncpa [#allocation4], 1 }

</bundles_post_ra>
